<compile_context>
chip_gen: v7x
topology: tpu7x:2x2x1
jax: 0.10.0
libtpu: 0.0.40
codegen_flags: <defaults>
</compile_context>

<pallas_src>
import jax
import jax.numpy as jnp
from jax.experimental import pallas as pl
from jax.experimental.pallas import tpu as pltpu

D_MODEL = 32
D_FF = 4 * D_MODEL          # d_ff = d_ff or 4 * d_model
LN_EPS = 1e-5               # nn.LayerNorm default eps
_LANE = 128


# ---------------------------------------------------------------------------
# Pallas kernel: whole layer on one lane-dense (D, tn) token block
# ---------------------------------------------------------------------------
def _layernorm_feat0(x, gamma, beta):
    """LayerNorm over the feature axis (axis 0) of a (D, tn) f32 tile."""
    mu = jnp.mean(x, axis=0, keepdims=True)                       # (1, tn) sublane reduce
    var = jnp.mean((x - mu) ** 2, axis=0, keepdims=True)
    return (x - mu) * jax.lax.rsqrt(var + LN_EPS) * gamma + beta  # gamma/beta are (D, 1)


def _encoder_fused_kernel(x_ref, wcT_ref, bc_ref,
                          g1_ref, be1_ref,
                          w1T_ref, b1_ref, w2T_ref, b2_ref,
                          g2_ref, be2_ref, o_ref):
    """Fused (all arrays transposed: features on sublanes, tokens on lanes):
         new_x = Wc^T @ x + bc          (folded attention stand-ins; flips cancel)
         xn    = norm1(x + new_x)
         y     = W2^T @ relu(W1^T @ xn + b1) + b2     (kernel_size=1 convs == matmuls)
         out   = norm2(xn + y)                        (dropout == identity, eval mode)
    """
    x = x_ref[...]                                                # (D, tn), io dtype
    new_x = (jnp.dot(wcT_ref[...], x.astype(wcT_ref.dtype),
                     preferred_element_type=jnp.float32) + bc_ref[...])
    x1 = x.astype(jnp.float32) + new_x
    xn = _layernorm_feat0(x1, g1_ref[...], be1_ref[...])

    h = (jnp.dot(w1T_ref[...], xn.astype(w1T_ref.dtype),
                 preferred_element_type=jnp.float32) + b1_ref[...])
    h = jnp.maximum(h, 0.0)
    y = (jnp.dot(w2T_ref[...], h.astype(w2T_ref.dtype),
                 preferred_element_type=jnp.float32) + b2_ref[...])

    o_ref[...] = _layernorm_feat0(xn + y, g2_ref[...], be2_ref[...]).astype(o_ref.dtype)


# ---------------------------------------------------------------------------
# Wrapper
# ---------------------------------------------------------------------------
def _round_up(a, m):
    return ((a + m - 1) // m) * m


def _choose_tiling(n, tn_target):
    """Pick (tile, padded_n, num_blocks): tiles are lane-aligned (x128), padding is
    spread across blocks, and we prefer >= 2 (even) blocks so v7x's two TensorCores
    both get work."""
    nb = max(1, -(-n // tn_target))          # cdiv
    if n > _LANE:                            # enough tokens for >= 2 lane-aligned blocks
        nb = max(nb, 2)
    if nb > 1 and nb % 2:
        nb += 1                              # multiple of 2 for megacore sharding
    tn = _round_up(-(-n // nb), _LANE)
    return tn, tn * nb, nb


def encoder_layer_forward(x, p, *, tn=8192, io_dtype=jnp.bfloat16,
                          mxu_dtype=jnp.bfloat16):
    """x: (B, L, D).  Returns (out, None) matching the torch module.

    io_dtype:  dtype of the activation slab fed to / inside the kernel (default bf16:
               halves HBM activation traffic; the residual therefore uses the
               bf16-quantized x).  LayerNorm / residual math is always f32.
    mxu_dtype: dtype of the matmul operands (weights + casted activations).
    The returned array always has x.dtype.
    """
    B, L, D = x.shape
    dff = p["w1"].shape[1]
    n = B * L
    out_dtype = x.dtype
    io_dtype = jnp.dtype(io_dtype)
    mxu_dtype = jnp.dtype(mxu_dtype)

    # Fold the two per-token attention stand-ins; transpose weights for the (D, N) layout.
    wcT = (p["wa"] + p["war"]).T.astype(mxu_dtype)            # (D, D)
    w1T = p["w1"].T.astype(mxu_dtype)                         # (dff, D)
    w2T = p["w2"].T.astype(mxu_dtype)                         # (D, dff)
    col = lambda v: v.astype(jnp.float32).reshape(-1, 1)      # sublane-aligned column
    bc, b1, b2 = col(p["ba"] + p["bar"]), col(p["b1"]), col(p["b2"])
    g1, be1, g2, be2 = col(p["g1"]), col(p["be1"]), col(p["g2"]), col(p["be2"])

    tn_eff, n_pad, nb = _choose_tiling(n, tn)

    # Relayout in the producer (not in-kernel): tokens onto the 128-lane axis.
    xT = x.reshape(n, D).astype(io_dtype).T                   # (D, n)
    if n_pad != n:
        xT = jnp.pad(xT, ((0, 0), (0, n_pad - n)))

    x_spec = pl.BlockSpec((D, tn_eff), lambda i: (0, i))
    o_spec = pl.BlockSpec((D, tn_eff), lambda i: (0, i))
    full = lambda shape: pl.BlockSpec(shape, lambda i: (0, 0))  # weights stay VMEM-resident

    flops = 2 * n_pad * (D * D + 2 * D * dff)
    bytes_accessed = (n_pad * D * (io_dtype.itemsize + jnp.dtype(out_dtype).itemsize)
                      + (D * D + 2 * D * dff) * mxu_dtype.itemsize)

    outT = pl.pallas_call(
        _encoder_fused_kernel,
        out_shape=jax.ShapeDtypeStruct((D, n_pad), out_dtype),
        grid=(nb,),
        in_specs=[
            x_spec,
            full((D, D)), full((D, 1)),            # fused attention weight / bias
            full((D, 1)), full((D, 1)),            # norm1 gamma / beta
            full((dff, D)), full((dff, 1)),        # conv1 weight / bias
            full((D, dff)), full((D, 1)),          # conv2 weight / bias
            full((D, 1)), full((D, 1)),            # norm2 gamma / beta
        ],
        out_specs=o_spec,
        compiler_params=pltpu.CompilerParams(
            dimension_semantics=("parallel",),     # megacore-shardable on v7x
            vmem_limit_bytes=40 * 1024 * 1024),    # headroom for 8K-token blocks on v5e
        cost_estimate=pl.CostEstimate(flops=flops, transcendentals=2 * n_pad,
                                      bytes_accessed=bytes_accessed),
    )(xT, wcT, bc, g1, be1, w1T, b1, w2T, b2, g2, be2)

    out = outT[:, :n].T.reshape(B, L, D)
    return out, None


# ---------------------------------------------------------------------------
# Plain-JAX reference (keeps the explicit flip plumbing of the torch module)
# ---------------------------------------------------------------------------
def reference_forward(x, p):
    def ln(v, g, b):
        mu = jnp.mean(v, axis=-1, keepdims=True)
        var = jnp.mean((v - mu) ** 2, axis=-1, keepdims=True)
        return (v - mu) / jnp.sqrt(var + LN_EPS) * g + b

    a = x @ p["wa"] + p["ba"]
    ar = jnp.flip(jnp.flip(x, axis=1) @ p["war"] + p["bar"], axis=1)
    x1 = x + a + ar
    xn = ln(x1, p["g1"], p["be1"])
    h = jnp.maximum(xn @ p["w1"] + p["b1"], 0.0)
    y = h @ p["w2"] + p["b2"]
    return ln(xn + y, p["g2"], p["be2"]), None


# ---------------------------------------------------------------------------
def make_params(key, d_model=D_MODEL, d_ff=D_FF):
    ks = jax.random.split(key, 8)
    s = 0.05
    return {
        # attention stand-ins (d_model -> d_model per-token linear)
        "wa": s * jax.random.normal(ks[0], (d_model, d_model), jnp.float32),
        "ba": s * jax.random.normal(ks[1], (d_model,), jnp.float32),
        "war": s * jax.random.normal(ks[2], (d_model, d_model), jnp.float32),
        "bar": s * jax.random.normal(ks[3], (d_model,), jnp.float32),
        # conv1: (d_ff, d_model, 1) torch weight -> (d_model, d_ff) matmul weight
        "w1": s * jax.random.normal(ks[4], (d_model, d_ff), jnp.float32),
        "b1": s * jax.random.normal(ks[5], (d_ff,), jnp.float32),
        # conv2: (d_model, d_ff, 1) torch weight -> (d_ff, d_model) matmul weight
        "w2": s * jax.random.normal(ks[6], (d_ff, d_model), jnp.float32),
        "b2": s * jax.random.normal(ks[7], (d_model,), jnp.float32),
        # LayerNorm params (torch default init)
        "g1": jnp.ones((d_model,), jnp.float32),
        "be1": jnp.zeros((d_model,), jnp.float32),
        "g2": jnp.ones((d_model,), jnp.float32),
        "be2": jnp.zeros((d_model,), jnp.float32),
    }


if __name__ == "__main__":
    key = jax.random.PRNGKey(0)
    kx, kp = jax.random.split(key)
    params = make_params(kp)

    # 1) Small f32 case (B=2, L=8, D=32), full-precision path: tight tolerance.
    x = jax.random.normal(kx, (2, 8, D_MODEL), jnp.float32)
    out, _ = encoder_layer_forward(x, params, io_dtype=jnp.float32,
                                   mxu_dtype=jnp.float32)
    out = jax.block_until_ready(out)
    ref, _ = reference_forward(x, params)
    assert out.shape == x.shape and out.dtype == x.dtype
    assert jnp.allclose(out, ref, atol=1e-4, rtol=1e-4), "f32 mismatch vs reference"

    # 2) B*L not a multiple of 128: exercises the lane-padded tail path (default bf16 io).
    x2 = jax.random.normal(jax.random.PRNGKey(1), (3, 7, D_MODEL), jnp.float32)
    out2, _ = encoder_layer_forward(x2, params)
    out2 = jax.block_until_ready(out2)
    ref2, _ = reference_forward(x2, params)
    assert out2.dtype == x2.dtype                     # output dtype follows the input
    assert jnp.allclose(out2, ref2, atol=1e-1, rtol=1e-1), "tail-padding mismatch"

    # 3) Multi-block grid (B=4, L=64 -> n=256 -> 2 blocks of 128 tokens), default bf16 io.
    x3 = jax.random.normal(jax.random.PRNGKey(2), (4, 64, D_MODEL), jnp.float32)
    out3, _ = encoder_layer_forward(x3, params)
    out3 = jax.block_until_ready(out3)
    ref3, _ = reference_forward(x3, params)
    assert out3.dtype == x3.dtype
    assert jnp.allclose(out3, ref3, atol=1e-1, rtol=1e-1), "bf16 multi-block mismatch"

    print("KERNEL_OK")
</pallas_src>

<mosaic_0001>
module attributes {stable_mosaic.version = 11 : i64} {
  func.func @_encoder_fused_kernel(%arg0: i32, %arg1: memref<32x128xf32, #tpu.memory_space<vmem>>, %arg2: memref<32x32xf32, #tpu.memory_space<vmem>>, %arg3: memref<32x1xf32, #tpu.memory_space<vmem>>, %arg4: memref<32x1xf32, #tpu.memory_space<vmem>>, %arg5: memref<32x1xf32, #tpu.memory_space<vmem>>, %arg6: memref<128x32xf32, #tpu.memory_space<vmem>>, %arg7: memref<128x1xf32, #tpu.memory_space<vmem>>, %arg8: memref<32x128xf32, #tpu.memory_space<vmem>>, %arg9: memref<32x1xf32, #tpu.memory_space<vmem>>, %arg10: memref<32x1xf32, #tpu.memory_space<vmem>>, %arg11: memref<32x1xf32, #tpu.memory_space<vmem>>, %arg12: memref<32x128xf32, #tpu.memory_space<vmem>>) attributes {dimension_semantics = [#tpu.dimension_semantics<parallel>], iteration_bounds = array<i64: 1>, scalar_prefetch = 0 : i64, scratch_operands = 0 : i64, tpu.core_type = #tpu.core_type<tc>, window_params = [{transform_indices = @transform_0, window_bounds = array<i64: 32, 128>}, {pipeline_mode = #tpu.pipeline_mode<synchronous>, transform_indices = @transform_1, window_bounds = array<i64: 32, 32>}, {pipeline_mode = #tpu.pipeline_mode<synchronous>, transform_indices = @transform_2, window_bounds = array<i64: 32, 1>}, {pipeline_mode = #tpu.pipeline_mode<synchronous>, transform_indices = @transform_3, window_bounds = array<i64: 32, 1>}, {pipeline_mode = #tpu.pipeline_mode<synchronous>, transform_indices = @transform_4, window_bounds = array<i64: 32, 1>}, {pipeline_mode = #tpu.pipeline_mode<synchronous>, transform_indices = @transform_5, window_bounds = array<i64: 128, 32>}, {pipeline_mode = #tpu.pipeline_mode<synchronous>, transform_indices = @transform_6, window_bounds = array<i64: 128, 1>}, {pipeline_mode = #tpu.pipeline_mode<synchronous>, transform_indices = @transform_7, window_bounds = array<i64: 32, 128>}, {pipeline_mode = #tpu.pipeline_mode<synchronous>, transform_indices = @transform_8, window_bounds = array<i64: 32, 1>}, {pipeline_mode = #tpu.pipeline_mode<synchronous>, transform_indices = @transform_9, window_bounds = array<i64: 32, 1>}, {pipeline_mode = #tpu.pipeline_mode<synchronous>, transform_indices = @transform_10, window_bounds = array<i64: 32, 1>}, {transform_indices = @transform_11, window_bounds = array<i64: 32, 128>}]} {
    %c0 = arith.constant 0 : index
    %c0_0 = arith.constant 0 : index
    %0 = vector.load %arg1[%c0, %c0_0] : memref<32x128xf32, #tpu.memory_space<vmem>>, vector<32x128xf32>
    %c0_1 = arith.constant 0 : index
    %c0_2 = arith.constant 0 : index
    %1 = vector.load %arg2[%c0_1, %c0_2] : memref<32x32xf32, #tpu.memory_space<vmem>>, vector<32x32xf32>
    %cst = arith.constant dense<0.000000e+00> : vector<32x128xf32>
    %2 = tpu.matmul %1, %0, %cst {dimension_numbers = #tpu.dot_dimension_numbers<[1], [0], [0], [1], [0, 0, 1, 1], [], []>} : vector<32x32xf32>, vector<32x128xf32>, vector<32x128xf32> -> vector<32x128xf32>
    %c0_3 = arith.constant 0 : index
    %c0_4 = arith.constant 0 : index
    %3 = vector.load %arg3[%c0_3, %c0_4] : memref<32x1xf32, #tpu.memory_space<vmem>>, vector<32x1xf32>
    %4 = vector.broadcast %3 : vector<32x1xf32> to vector<32x128xf32>
    %5 = arith.addf %2, %4 : vector<32x128xf32>
    %6 = arith.addf %0, %5 : vector<32x128xf32>
    %c0_5 = arith.constant 0 : index
    %c0_6 = arith.constant 0 : index
    %7 = vector.load %arg4[%c0_5, %c0_6] : memref<32x1xf32, #tpu.memory_space<vmem>>, vector<32x1xf32>
    %c0_7 = arith.constant 0 : index
    %c0_8 = arith.constant 0 : index
    %8 = vector.load %arg5[%c0_7, %c0_8] : memref<32x1xf32, #tpu.memory_space<vmem>>, vector<32x1xf32>
    %cst_9 = arith.constant dense<0.000000e+00> : vector<128xf32>
    %9 = vector.multi_reduction <add>, %6, %cst_9 [0] : vector<32x128xf32> to vector<128xf32>
    %10 = vector.shape_cast %9 : vector<128xf32> to vector<1x128xf32>
    %cst_10 = arith.constant 3.200000e+01 : f32
    %11 = vector.broadcast %cst_10 : f32 to vector<1x128xf32>
    %12 = arith.divf %10, %11 : vector<1x128xf32>
    %13 = vector.broadcast %12 : vector<1x128xf32> to vector<32x128xf32>
    %14 = arith.subf %6, %13 : vector<32x128xf32>
    %15 = arith.mulf %14, %14 : vector<32x128xf32>
    %cst_11 = arith.constant dense<0.000000e+00> : vector<128xf32>
    %16 = vector.multi_reduction <add>, %15, %cst_11 [0] : vector<32x128xf32> to vector<128xf32>
    %17 = vector.shape_cast %16 : vector<128xf32> to vector<1x128xf32>
    %cst_12 = arith.constant 3.200000e+01 : f32
    %18 = vector.broadcast %cst_12 : f32 to vector<1x128xf32>
    %19 = arith.divf %17, %18 : vector<1x128xf32>
    %20 = vector.broadcast %12 : vector<1x128xf32> to vector<32x128xf32>
    %21 = arith.subf %6, %20 : vector<32x128xf32>
    %cst_13 = arith.constant 9.99999974E-6 : f32
    %22 = vector.broadcast %cst_13 : f32 to vector<1x128xf32>
    %23 = arith.addf %19, %22 : vector<1x128xf32>
    %24 = math.rsqrt %23 : vector<1x128xf32>
    %25 = vector.broadcast %24 : vector<1x128xf32> to vector<32x128xf32>
    %26 = arith.mulf %21, %25 : vector<32x128xf32>
    %27 = vector.broadcast %7 : vector<32x1xf32> to vector<32x128xf32>
    %28 = arith.mulf %26, %27 : vector<32x128xf32>
    %29 = vector.broadcast %8 : vector<32x1xf32> to vector<32x128xf32>
    %30 = arith.addf %28, %29 : vector<32x128xf32>
    %c0_14 = arith.constant 0 : index
    %c0_15 = arith.constant 0 : index
    %31 = vector.load %arg6[%c0_14, %c0_15] : memref<128x32xf32, #tpu.memory_space<vmem>>, vector<128x32xf32>
    %cst_16 = arith.constant dense<0.000000e+00> : vector<128x128xf32>
    %32 = tpu.matmul %31, %30, %cst_16 {dimension_numbers = #tpu.dot_dimension_numbers<[1], [0], [0], [1], [0, 0, 1, 1], [], []>} : vector<128x32xf32>, vector<32x128xf32>, vector<128x128xf32> -> vector<128x128xf32>
    %c0_17 = arith.constant 0 : index
    %c0_18 = arith.constant 0 : index
    %33 = vector.load %arg7[%c0_17, %c0_18] : memref<128x1xf32, #tpu.memory_space<vmem>>, vector<128x1xf32>
    %34 = vector.broadcast %33 : vector<128x1xf32> to vector<128x128xf32>
    %35 = arith.addf %32, %34 : vector<128x128xf32>
    %cst_19 = arith.constant 0.000000e+00 : f32
    %36 = vector.broadcast %cst_19 : f32 to vector<128x128xf32>
    %37 = arith.maximumf %35, %36 : vector<128x128xf32>
    %c0_20 = arith.constant 0 : index
    %c0_21 = arith.constant 0 : index
    %38 = vector.load %arg8[%c0_20, %c0_21] : memref<32x128xf32, #tpu.memory_space<vmem>>, vector<32x128xf32>
    %cst_22 = arith.constant dense<0.000000e+00> : vector<32x128xf32>
    %39 = tpu.matmul %38, %37, %cst_22 {dimension_numbers = #tpu.dot_dimension_numbers<[1], [0], [0], [1], [0, 0, 1, 1], [], []>} : vector<32x128xf32>, vector<128x128xf32>, vector<32x128xf32> -> vector<32x128xf32>
    %c0_23 = arith.constant 0 : index
    %c0_24 = arith.constant 0 : index
    %40 = vector.load %arg9[%c0_23, %c0_24] : memref<32x1xf32, #tpu.memory_space<vmem>>, vector<32x1xf32>
    %41 = vector.broadcast %40 : vector<32x1xf32> to vector<32x128xf32>
    %42 = arith.addf %39, %41 : vector<32x128xf32>
    %43 = arith.addf %30, %42 : vector<32x128xf32>
    %c0_25 = arith.constant 0 : index
    %c0_26 = arith.constant 0 : index
    %44 = vector.load %arg10[%c0_25, %c0_26] : memref<32x1xf32, #tpu.memory_space<vmem>>, vector<32x1xf32>
    %c0_27 = arith.constant 0 : index
    %c0_28 = arith.constant 0 : index
    %45 = vector.load %arg11[%c0_27, %c0_28] : memref<32x1xf32, #tpu.memory_space<vmem>>, vector<32x1xf32>
    %cst_29 = arith.constant dense<0.000000e+00> : vector<128xf32>
    %46 = vector.multi_reduction <add>, %43, %cst_29 [0] : vector<32x128xf32> to vector<128xf32>
    %47 = vector.shape_cast %46 : vector<128xf32> to vector<1x128xf32>
    %cst_30 = arith.constant 3.200000e+01 : f32
    %48 = vector.broadcast %cst_30 : f32 to vector<1x128xf32>
    %49 = arith.divf %47, %48 : vector<1x128xf32>
    %50 = vector.broadcast %49 : vector<1x128xf32> to vector<32x128xf32>
    %51 = arith.subf %43, %50 : vector<32x128xf32>
    %52 = arith.mulf %51, %51 : vector<32x128xf32>
    %cst_31 = arith.constant dense<0.000000e+00> : vector<128xf32>
    %53 = vector.multi_reduction <add>, %52, %cst_31 [0] : vector<32x128xf32> to vector<128xf32>
    %54 = vector.shape_cast %53 : vector<128xf32> to vector<1x128xf32>
    %cst_32 = arith.constant 3.200000e+01 : f32
    %55 = vector.broadcast %cst_32 : f32 to vector<1x128xf32>
    %56 = arith.divf %54, %55 : vector<1x128xf32>
    %57 = vector.broadcast %49 : vector<1x128xf32> to vector<32x128xf32>
    %58 = arith.subf %43, %57 : vector<32x128xf32>
    %cst_33 = arith.constant 9.99999974E-6 : f32
    %59 = vector.broadcast %cst_33 : f32 to vector<1x128xf32>
    %60 = arith.addf %56, %59 : vector<1x128xf32>
    %61 = math.rsqrt %60 : vector<1x128xf32>
    %62 = vector.broadcast %61 : vector<1x128xf32> to vector<32x128xf32>
    %63 = arith.mulf %58, %62 : vector<32x128xf32>
    %64 = vector.broadcast %44 : vector<32x1xf32> to vector<32x128xf32>
    %65 = arith.mulf %63, %64 : vector<32x128xf32>
    %66 = vector.broadcast %45 : vector<32x1xf32> to vector<32x128xf32>
    %67 = arith.addf %65, %66 : vector<32x128xf32>
    %c0_34 = arith.constant 0 : index
    %c0_35 = arith.constant 0 : index
    %68 = vector.load %arg12[%c0_34, %c0_35] : memref<32x128xf32, #tpu.memory_space<vmem>>, vector<32x128xf32>
    tpu.vector_store %arg12[%c0_34, %c0_35], %67 {strides = array<i32>} : memref<32x128xf32, #tpu.memory_space<vmem>>, vector<32x128xf32>,
    return
  }
  func.func @transform_0(%arg0: i32) -> (i32, i32) {
    %c0_i32 = arith.constant 0 : i32
    %c0_i32_0 = arith.constant 0 : i32
    return %c0_i32, %arg0 : i32, i32
  }
  func.func @transform_1(%arg0: i32) -> (i32, i32) {
    %c0_i32 = arith.constant 0 : i32
    %c0_i32_0 = arith.constant 0 : i32
    %c0_i32_1 = arith.constant 0 : i32
    return %c0_i32, %c0_i32_0 : i32, i32
  }
  func.func @transform_2(%arg0: i32) -> (i32, i32) {
    %c0_i32 = arith.constant 0 : i32
    %c0_i32_0 = arith.constant 0 : i32
    %c0_i32_1 = arith.constant 0 : i32
    return %c0_i32, %c0_i32_0 : i32, i32
  }
  func.func @transform_3(%arg0: i32) -> (i32, i32) {
    %c0_i32 = arith.constant 0 : i32
    %c0_i32_0 = arith.constant 0 : i32
    %c0_i32_1 = arith.constant 0 : i32
    return %c0_i32, %c0_i32_0 : i32, i32
  }
  func.func @transform_4(%arg0: i32) -> (i32, i32) {
    %c0_i32 = arith.constant 0 : i32
    %c0_i32_0 = arith.constant 0 : i32
    %c0_i32_1 = arith.constant 0 : i32
    return %c0_i32, %c0_i32_0 : i32, i32
  }
  func.func @transform_5(%arg0: i32) -> (i32, i32) {
    %c0_i32 = arith.constant 0 : i32
    %c0_i32_0 = arith.constant 0 : i32
    %c0_i32_1 = arith.constant 0 : i32
    return %c0_i32, %c0_i32_0 : i32, i32
  }
  func.func @transform_6(%arg0: i32) -> (i32, i32) {
    %c0_i32 = arith.constant 0 : i32
    %c0_i32_0 = arith.constant 0 : i32
    %c0_i32_1 = arith.constant 0 : i32
    return %c0_i32, %c0_i32_0 : i32, i32
  }
  func.func @transform_7(%arg0: i32) -> (i32, i32) {
    %c0_i32 = arith.constant 0 : i32
    %c0_i32_0 = arith.constant 0 : i32
    %c0_i32_1 = arith.constant 0 : i32
    return %c0_i32, %c0_i32_0 : i32, i32
  }
  func.func @transform_8(%arg0: i32) -> (i32, i32) {
    %c0_i32 = arith.constant 0 : i32
    %c0_i32_0 = arith.constant 0 : i32
    %c0_i32_1 = arith.constant 0 : i32
    return %c0_i32, %c0_i32_0 : i32, i32
  }
  func.func @transform_9(%arg0: i32) -> (i32, i32) {
    %c0_i32 = arith.constant 0 : i32
    %c0_i32_0 = arith.constant 0 : i32
    %c0_i32_1 = arith.constant 0 : i32
    return %c0_i32, %c0_i32_0 : i32, i32
  }
  func.func @transform_10(%arg0: i32) -> (i32, i32) {
    %c0_i32 = arith.constant 0 : i32
    %c0_i32_0 = arith.constant 0 : i32
    %c0_i32_1 = arith.constant 0 : i32
    return %c0_i32, %c0_i32_0 : i32, i32
  }
  func.func @transform_11(%arg0: i32) -> (i32, i32) {
    %c0_i32 = arith.constant 0 : i32
    %c0_i32_0 = arith.constant 0 : i32
    return %c0_i32, %arg0 : i32, i32
  }
}

</mosaic_0001>

<bundles_post_ra>
// kernel: tpu_custom_call.1
= control target key start
LH: loop header
LB: loop body
LE: loop exit
PB: predicated region body
PF: predicated region fallthrough
CT: control target
= control target key end

     0   :  { %vm71_vm0 = vcmask 261120   ;;  %v1062_v6 = vmov 0   ;;  %s1394_s0 = inlined_call_operand.vmem [shape: f32[32,128], index: 0, kind: input, shape index: {}]   ;;  %s1395_s1 = inlined_call_operand.vmem [shape: f32[32,32], index: 1, kind: input, shape index: {}]   ;;  %s1396_s2 = inlined_call_operand.vmem [shape: f32[32,1], index: 2, kind: input, shape index: {}]   ;;  %s1397_s3 = inlined_call_operand.vmem [shape: f32[32,1], index: 3, kind: input, shape index: {}]   ;;  %s1398_s4 = inlined_call_operand.vmem [shape: f32[32,1], index: 4, kind: input, shape index: {}]   ;;  %s1399_s5 = inlined_call_operand.vmem [shape: f32[128,32], index: 5, kind: input, shape index: {}]   ;;  %s1400_s6 = inlined_call_operand.vmem [shape: f32[128,1], index: 6, kind: input, shape index: {}]   ;;  %s1401_s7 = inlined_call_operand.vmem [shape: f32[32,128], index: 7, kind: input, shape index: {}]   ;;  %s1402_s8 = inlined_call_operand.vmem [shape: f32[32,1], index: 8, kind: input, shape index: {}]   ;;  %s1403_s9 = inlined_call_operand.vmem [shape: f32[32,1], index: 9, kind: input, shape index: {}]   ;;  %s1404_s10 = inlined_call_operand.vmem [shape: f32[32,1], index: 10, kind: input, shape index: {}]   ;;  %s1405_s11 = inlined_call_operand.hbm [shape: f32[32,128], index: 11, kind: output, shape index: {}]  }
   0x1   :  { %v1129_v0 = vld [vmem:[%s1394_s0] sm:$0xff]  ;;  %v1134_v1 = vld [vmem:[%s1394_s0 + $0x8] sm:$0xff]  ;;  %v1139_v2 = vld [vmem:[%s1394_s0 + $0x10] sm:$0xff]  ;;  %1032 = vset.pattern.permute.xlu0 %v1062_v6  ;;  %1033 = vset.pattern.permute.xlu1 %v1062_v6 }
   0x2   :  { %v964_v3 = vpack.c.bf16 %v1134_v1, %v1129_v0  ;;  %v1146_v4 = vld [vmem:[%s1394_s0 + $0x18] sm:$0xff]  ;;  %v43_v5 = vld [vmem:[%s1395_s1] sm:$0xff]  ;;  %v49_v9 = vld [vmem:[%s1396_s2 + $0x10] sm:$0xff] }
   0x3   :  { %v968_v7 = vpack.c.bf16 %v1146_v4, %v1139_v2  ;;  %888 = vmatprep.mubr.msk.f32.mxu0 %vm71_vm0, %v43_v5  ;;  %v47_v8 = vld [vmem:[%s1396_s2] sm:$0xff]  ;;  %63 = vperm.xlu1 %1033, %v49_v9   ;;  %v48_v10 = vld [vmem:[%s1396_s2 + $0x8] sm:$0xff]  ;;  %v50_v11 = vld [vmem:[%s1396_s2 + $0x18] sm:$0xff] }
   0x4   :  { %965 = vmatprep.subr.bf16.mxu0 %v964_v3  ;;  %53 = vperm.xlu0 %1032, %v47_v8   ;;  %v44_v12 = vld [vmem:[%s1395_s1 + $0x8] sm:$0xff]  ;;  %v173_v13 = vld [vmem:[%s1397_s3] sm:$0xff]  ;;  %v45_v14 = vld [vmem:[%s1395_s1 + $0x10] sm:$0xff] }
   0x5   :  { %967 = vmatpush3.bf16.msra.mxu0 %v964_v3  ;;  %v174_v15 = vld [vmem:[%s1397_s3 + $0x8] sm:$0xff]  ;;  %v46_v16 = vld [vmem:[%s1395_s1 + $0x18] sm:$0xff]  ;;  %v177_v17 = vld [vmem:[%s1398_s4] sm:$0xff] }
   0x6   :  { %969 = vmatprep.subr.bf16.mxu0 %v968_v7  ;;  %v178_v18 = vld [vmem:[%s1398_s4 + $0x8] sm:$0xff]  ;;  %v175_v19 = vld [vmem:[%s1397_s3 + $0x10] sm:$0xff] }
   0x7   :  { %68 = vperm.xlu1 %1033, %v50_v11  }
   0x8   :  { %58 = vperm.xlu0 %1032, %v48_v10  }
   0x9   :  { %971 = vmatpush3.bf16.msra.mxu0 %v968_v7 }
   0xb   :  { %223 = vperm.xlu1 %1033, %v174_v15  }
   0xc   :  { %889 = vmatmul.mubr.msk.f32.vlgmr.msra.gmra.mrb[0].mxu0 %vm71_vm0, %v44_v12  ;;  %218 = vperm.xlu0 %1032, %v173_v13  }
   0xd   :  { %891 = vmatprep.mubr.msk.f32.mxu0 %vm71_vm0, %v45_v14 }
   0xf   :  { %247 = vperm.xlu1 %1033, %v178_v18  }
  0x10   :  { %892 = vmatmul.mubr.msk.f32.gmra.mrb[2].mxu0 %vm71_vm0, %v46_v16  ;;  %242 = vperm.xlu0 %1032, %v177_v17  }
  0x11   :  { %16 = vsyncpa [#allocation3], 0  ;;  %v176_v20 = vld [vmem:[%s1397_s3 + $0x18] sm:$0xff]  ;;  %v179_v21 = vld [vmem:[%s1398_s4 + $0x10] sm:$0xff] }
  0x12   :  { %v180_v22 = vld [vmem:[%s1398_s4 + $0x18] sm:$0xff]  ;;  %v280_v23 = vld [vmem:[%s1400_s6] sm:$0xff]  ;;  %v281_v24 = vld [vmem:[%s1400_s6 + $0x8] sm:$0xff] }
  0x13   :  { %233 = vperm.xlu1 %1033, %v176_v20   ;;  %v282_v25 = vld [vmem:[%s1400_s6 + $0x10] sm:$0xff]  ;;  %v283_v26 = vld [vmem:[%s1400_s6 + $0x18] sm:$0xff]  ;;  %v284_v27 = vld [vmem:[%s1400_s6 + $0x20] sm:$0xff] }
  0x14   :  { %228 = vperm.xlu0 %1032, %v175_v19   ;;  %v285_v28 = vld [vmem:[%s1400_s6 + $0x28] sm:$0xff]  ;;  %v286_v29 = vld [vmem:[%s1400_s6 + $0x30] sm:$0xff]  ;;  %v287_v30 = vld [vmem:[%s1400_s6 + $0x38] sm:$0xff] }
  0x15   :  { %v288_v31 = vld [vmem:[%s1400_s6 + $0x40] sm:$0xff]  ;;  %v289_v32 = vld [vmem:[%s1400_s6 + $0x48] sm:$0xff]  ;;  %v290_v33 = vld [vmem:[%s1400_s6 + $0x50] sm:$0xff] }
  0x16   :  { %v291_v34 = vld [vmem:[%s1400_s6 + $0x58] sm:$0xff]  ;;  %v292_v35 = vld [vmem:[%s1400_s6 + $0x60] sm:$0xff]  ;;  %v293_v36 = vld [vmem:[%s1400_s6 + $0x68] sm:$0xff] }
  0x17   :  { %257 = vperm.xlu1 %1033, %v180_v22   ;;  %v294_v37 = vld [vmem:[%s1400_s6 + $0x70] sm:$0xff]  ;;  %v295_v38 = vld [vmem:[%s1400_s6 + $0x78] sm:$0xff]  ;;  %v589_v39 = vld [vmem:[%s1402_s8] sm:$0xff] }
  0x18   :  { %252 = vperm.xlu0 %1032, %v179_v21   ;;  %v590_v40 = vld [vmem:[%s1402_s8 + $0x8] sm:$0xff]  ;;  %v591_v41 = vld [vmem:[%s1402_s8 + $0x10] sm:$0xff]  ;;  %v592_v42 = vld [vmem:[%s1402_s8 + $0x18] sm:$0xff] }
  0x19   :  { %v702_v43 = vld [vmem:[%s1403_s9] sm:$0xff]  ;;  %v703_v44 = vld [vmem:[%s1403_s9 + $0x8] sm:$0xff]  ;;  %v704_v45 = vld [vmem:[%s1403_s9 + $0x10] sm:$0xff] }
  0x1a   :  { %v705_v46 = vld [vmem:[%s1403_s9 + $0x18] sm:$0xff]  ;;  %v706_v47 = vld [vmem:[%s1404_s10] sm:$0xff]  ;;  %v707_v48 = vld [vmem:[%s1404_s10 + $0x8] sm:$0xff] }
  0x1b   :  { %303 = vperm.xlu1 %1033, %v281_v24   ;;  %v708_v49 = vld [vmem:[%s1404_s10 + $0x10] sm:$0xff]  ;;  %v709_v50 = vld [vmem:[%s1404_s10 + $0x18] sm:$0xff]  ;;  %v264_v51 = vld [vmem:[%s1399_s5] sm:$0xff] }
  0x1c   :  { %298 = vperm.xlu0 %1032, %v280_v23   ;;  %902 = vmatprep.mubr.msk.f32.mxu1 %vm71_vm0, %v264_v51 }
  0x1f   :  { %313 = vperm.xlu1 %1033, %v283_v26  }
  0x20   :  { %308 = vperm.xlu0 %1032, %v282_v25  }
  0x23   :  { %323 = vperm.xlu1 %1033, %v285_v28  }
  0x24   :  { %318 = vperm.xlu0 %1032, %v284_v27  }
  0x27   :  { %333 = vperm.xlu1 %1033, %v287_v30  }
  0x28   :  { %328 = vperm.xlu0 %1032, %v286_v29  }
  0x2b   :  { %343 = vperm.xlu1 %1033, %v289_v32  }
  0x2c   :  { %338 = vperm.xlu0 %1032, %v288_v31  }
  0x2f   :  { %353 = vperm.xlu1 %1033, %v291_v34  }
  0x30   :  { %348 = vperm.xlu0 %1032, %v290_v33  }
  0x33   :  { %363 = vperm.xlu1 %1033, %v293_v36  }
  0x34   :  { %358 = vperm.xlu0 %1032, %v292_v35  }
  0x37   :  { %373 = vperm.xlu1 %1033, %v295_v38  }
  0x38   :  { %368 = vperm.xlu0 %1032, %v294_v37  }
  0x3b   :  { %600 = vperm.xlu1 %1033, %v590_v40  }
  0x3c   :  { %595 = vperm.xlu0 %1032, %v589_v39  }
  0x3f   :  { %610 = vperm.xlu1 %1033, %v592_v42  }
  0x40   :  { %605 = vperm.xlu0 %1032, %v591_v41  }
  0x43   :  { %751 = vperm.xlu1 %1033, %v703_v44  }
  0x44   :  { %746 = vperm.xlu0 %1032, %v702_v43  }
  0x47   :  { %761 = vperm.xlu1 %1033, %v705_v46  }
  0x48   :  { %756 = vperm.xlu0 %1032, %v704_v45  }
  0x4b   :  { %775 = vperm.xlu1 %1033, %v707_v48  }
  0x4c   :  { %770 = vperm.xlu0 %1032, %v706_v47  }
  0x4f   :  { %785 = vperm.xlu1 %1033, %v709_v50  }
  0x50   :  { %780 = vperm.xlu0 %1032, %v708_v49  }
  0x82   :  { %v64_v53 = vpop.permute.xlu1 %63 }
  0x83   :  { %v54_v52 = vpop.permute.xlu0 %53 }
  0x86   :  { %v69_v62 = vpop.permute.xlu1 %68 }
  0x87   :  { %v59_v54 = vpop.permute.xlu0 %58 }
  0x8a   :  { %v224_v32 = vpop.permute.xlu1 %223 }
  0x8b   :  { %v219_v31 = vpop.permute.xlu0 %218 }
  0x8e   :  { %v248_v36 = vpop.permute.xlu1 %247 }
  0x8f   :  { %v243_v35 = vpop.permute.xlu0 %242 }
  0x92   :  { %v234_v38 = vpop.permute.xlu1 %233 }
  0x93   :  { %v229_v37 = vpop.permute.xlu0 %228 }
  0x96   :  { %v258_v49 = vpop.permute.xlu1 %257 }
  0x97   :  { %v253_v48 = vpop.permute.xlu0 %252 }
  0xdf   :  { %v890_v55 = vpop.f32.mrb[0].mxu0 }
  0xe0   :  { %v156_v56 = vadd.f32 %v890_v55, %v59_v54  ;;  %v150_v57 = vpop.f32.mrb[1].mxu0 }
  0xe1   :  { %v151_v58 = vadd.f32 %v150_v57, %v54_v52  ;;  %v266_v57 = vld [vmem:[%s1399_s5 + $0x10] sm:$0xff] }
  0xe2   :  { %v170_v59 = vadd.f32 %v156_v56, %v1134_v1  ;;  %v265_v56 = vld [vmem:[%s1399_s5 + $0x8] sm:$0xff] }
  0xe3   :  { %v169_v60 = vadd.f32 %v151_v58, %v1129_v0  ;;  %v893_v61 = vpop.f32.mrb[2].mxu0  ;;  %v267_v58 = vld [vmem:[%s1399_s5 + $0x18] sm:$0xff] }
  0xe4   :  { %v160_v63 = vpop.f32.mrb[3].mxu0  ;;  %v166_v5 = vadd.f32 %v893_v61, %v69_v62  ;;  %v270_v61 = vld [vmem:[%s1399_s5 + $0x30] sm:$0xff]  ;;  %v271_v62 = vld [vmem:[%s1399_s5 + $0x38] sm:$0xff] }
  0xe5   :  { %v181_v3 = vadd.f32 %v170_v59, %v169_v60  ;;  %v161_v6 = vadd.f32 %v160_v63, %v64_v53  ;;  %v272_v63 = vld [vmem:[%s1399_s5 + $0x40] sm:$0xff] }
  0xe6   :  { %v172_v8 = vadd.f32 %v166_v5, %v1146_v4  ;;  %v274_v5 = vld [vmem:[%s1399_s5 + $0x50] sm:$0xff] }
  0xe7   :  { %v171_v7 = vadd.f32 %v161_v6, %v1139_v2  ;;  %v275_v6 = vld [vmem:[%s1399_s5 + $0x58] sm:$0xff] }
  0xe9   :  { %v182_v9 = vadd.f32 %v181_v3, %v171_v7  ;;  %v273_v3 = vld [vmem:[%s1399_s5 + $0x48] sm:$0xff] }
  0xeb   :  { %v183_v10 = vadd.f32 %v182_v9, %v172_v8  ;;  %v278_v9 = vld [vmem:[%s1399_s5 + $0x70] sm:$0xff] }
  0xed   :  { %v184_v11 = vrot.slane %v183_v10, 4 }
  0xef   :  { %v185_v12 = vadd.f32 %v184_v11, %v183_v10  ;;  %v279_v10 = vld [vmem:[%s1399_s5 + $0x78] sm:$0xff]  ;;  %v585_v11 = vld [vmem:[%s1401_s7] sm:$0xff] }
  0xf0   :  { %958 = vmatprep.mubr.f32.mxu0 %v585_v11 }
  0xf1   :  { %v186_v13 = vrot.slane %v185_v12, 2 }
  0xf3   :  { %v187_v14 = vadd.f32 %v186_v13, %v185_v12  ;;  %v587_v12 = vld [vmem:[%s1401_s7 + $0x10] sm:$0xff]  ;;  %v304_v13 = vpop.permute.xlu1 %303 }
  0xf5   :  { %v188_v15 = vrot.slane %v187_v14, 1 }
  0xf7   :  { %v189_v1 = vadd.f32 %v188_v15, %v187_v14  ;;  %v299_v14 = vpop.permute.xlu0 %298  ;;  %v314_v15 = vpop.permute.xlu1 %313 }
  0xf9   :  { %v191_v16 = vmul.f32 0.03125, %v189_v1 }
  0xfb   :  { %v192_v0 = vsub.f32 %v169_v60, %v191_v16  ;;  %v193_v17 = vsub.f32 %v170_v59, %v191_v16  ;;  %v194_v18 = vsub.f32 %v171_v7, %v191_v16  ;;  %v195_v19 = vsub.f32 %v172_v8, %v191_v16  ;;  %v268_v59 = vld [vmem:[%s1399_s5 + $0x20] sm:$0xff]  ;;  %v269_v60 = vld [vmem:[%s1399_s5 + $0x28] sm:$0xff]  ;;  %v309_v1 = vpop.permute.xlu0 %308  ;;  %v324_v16 = vpop.permute.xlu1 %323 }
  0xfc   :  { %v276_v7 = vld [vmem:[%s1399_s5 + $0x60] sm:$0xff]  ;;  %v277_v8 = vld [vmem:[%s1399_s5 + $0x68] sm:$0xff] }
  0xfd   :  { %v196_v20 = vmul.f32 %v192_v0, %v192_v0  ;;  %v197_v21 = vmul.f32 %v193_v17, %v193_v17  ;;  %v198_v22 = vmul.f32 %v194_v18, %v194_v18  ;;  %v199_v2 = vmul.f32 %v195_v19, %v195_v19 }
  0xff   :  { %v200_v23 = vadd.f32 %v197_v21, %v196_v20 }
 0x101   :  { %v201_v24 = vadd.f32 %v200_v23, %v198_v22  ;;  %v334_v22 = vpop.permute.xlu1 %333 }
 0x103   :  { %v202_v4 = vadd.f32 %v201_v24, %v199_v2 }
 0x105   :  { %v203_v25 = vrot.slane %v202_v4, 4 }
 0x107   :  { %v204_v26 = vadd.f32 %v203_v25, %v202_v4 }
 0x109   :  { %v205_v27 = vrot.slane %v204_v26, 2 }
 0x10b   :  { %v206_v28 = vadd.f32 %v205_v27, %v204_v26 }
 0x10d   :  { %v207_v29 = vrot.slane %v206_v28, 1 }
 0x10f   :  { %v208_v30 = vadd.f32 %v207_v29, %v206_v28 }
 0x111   :  { %v209_v33 = vmul.f32 0.03125, %v208_v30 }
 0x113   :  { %v210_v34 = vadd.f32 1e-05, %v209_v33  ;;  %v344_v33 = vpop.permute.xlu1 %343 }
 0x115   :  { %1034 = vrsqrt.f32 %v210_v34 }
 0x11f   :  { %v1035_v39 = vpop.eup %1034 }
 0x120   :  { %v214_v40 = vmul.f32 %v1035_v39, %v194_v18  ;;  %v212_v41 = vmul.f32 %v1035_v39, %v192_v0  ;;  %v213_v42 = vmul.f32 %v1035_v39, %v193_v17  ;;  %v215_v43 = vmul.f32 %v1035_v39, %v195_v19  ;;  %v319_v0 = vpop.permute.xlu0 %318 }
 0x122   :  { %v236_v44 = vmul.f32 %v219_v31, %v212_v41  ;;  %v237_v45 = vmul.f32 %v224_v32, %v213_v42  ;;  %v238_v46 = vmul.f32 %v229_v37, %v214_v40  ;;  %v239_v47 = vmul.f32 %v234_v38, %v215_v43 }
 0x124   :  { %v1294_v50 = vadd.f32 %v243_v35, %v236_v44  ;;  %v1296_v51 = vadd.f32 %v248_v36, %v237_v45  ;;  %v1298_v52 = vadd.f32 %v253_v48, %v238_v46  ;;  %v1300_v53 = vadd.f32 %v258_v49, %v239_v47  ;;  %v329_v24 = vpop.permute.xlu0 %328  ;;  %v354_v45 = vpop.permute.xlu1 %353 }
 0x126   :  { %v972_v54 = vpack.c.bf16 %v1296_v51, %v1294_v50  ;;  %v976_v55 = vpack.c.bf16 %v1300_v53, %v1298_v52 }
 0x128   :  { %973 = vmatprep.subr.bf16.mxu1 %v972_v54  ;;  %v339_v36 = vpop.permute.xlu0 %338 }
 0x129   :  { %975 = vmatpush3.bf16.msra.mxu1 %v972_v54 }
 0x12a   :  { %977 = vmatprep.subr.bf16.mxu1 %v976_v55 }
 0x12c   :  { %v349_v48 = vpop.permute.xlu0 %348 }
 0x12d   :  { %979 = vmatpush3.bf16.msra.mxu1 %v976_v55 }
 0x130   :  { %903 = vmatmul.mubr.msk.f32.vlgmr.msra.gmra.mrb[0].mxu1 %vm71_vm0, %v265_v56 }
 0x131   :  { %905 = vmatprep.mubr.msk.f32.mxu1 %vm71_vm0, %v266_v57 }
 0x134   :  { %906 = vmatmul.mubr.msk.f32.gmra.mrb[2].mxu1 %vm71_vm0, %v267_v58 }
 0x135   :  { %908 = vmatprep.mubr.msk.f32.mxu1 %vm71_vm0, %v268_v59 }
 0x138   :  { %909 = vmatmul.mubr.msk.f32.gmra.mrb[4].mxu1 %vm71_vm0, %v269_v60 }
 0x139   :  { %911 = vmatprep.mubr.msk.f32.mxu1 %vm71_vm0, %v270_v61 }
 0x13c   :  { %912 = vmatmul.mubr.msk.f32.gmra.mrb[6].mxu1 %vm71_vm0, %v271_v62  ;;  %v364_v62 = vpop.permute.xlu1 %363 }
 0x13d   :  { %914 = vmatprep.mubr.msk.f32.mxu1 %vm71_vm0, %v272_v63 }
 0x140   :  { %915 = vmatmul.mubr.msk.f32.gmra.mrb[8].mxu1 %vm71_vm0, %v273_v3 }
 0x141   :  { %917 = vmatprep.mubr.msk.f32.mxu1 %vm71_vm0, %v274_v5  ;;  %v359_v5 = vpop.permute.xlu0 %358 }
 0x144   :  { %918 = vmatmul.mubr.msk.f32.gmra.mrb[10].mxu1 %vm71_vm0, %v275_v6 }
 0x145   :  { %920 = vmatprep.mubr.msk.f32.mxu1 %vm71_vm0, %v276_v7 }
 0x148   :  { %921 = vmatmul.mubr.msk.f32.gmra.mrb[12].mxu1 %vm71_vm0, %v277_v8 }
 0x149   :  { %923 = vmatprep.mubr.msk.f32.mxu1 %vm71_vm0, %v278_v9 }
 0x14c   :  { %924 = vmatmul.mubr.msk.f32.gmra.mrb[14].mxu1 %vm71_vm0, %v279_v10 }
 0x14d   :  { %961 = vmatprep.mubr.f32.mxu1 %v587_v12 }
 0x203   :  { %v904_v17 = vpop.f32.mrb[0].mxu1 }
 0x204   :  { %v496_v18 = vadd.f32 %v904_v17, %v304_v13  ;;  %v490_v19 = vpop.f32.mrb[1].mxu1 }
 0x205   :  { %v491_v20 = vadd.f32 %v490_v19, %v299_v14  ;;  %v374_v14 = vpop.permute.xlu1 %373 }
 0x206   :  { %v570_v21 = vmax.f32 %v496_v18, 0.0 }
 0x207   :  { %v569_v23 = vmax.f32 %v491_v20, 0.0  ;;  %v907_v2 = vpop.f32.mrb[2].mxu1 }
 0x208   :  { %v506_v4 = vadd.f32 %v907_v2, %v314_v15  ;;  %v500_v25 = vpop.f32.mrb[3].mxu1  ;;  %v588_v2 = vld [vmem:[%s1401_s7 + $0x18] sm:$0xff] }
 0x209   :  { %v980_v26 = vpack.c.bf16 %v570_v21, %v569_v23  ;;  %v501_v27 = vadd.f32 %v500_v25, %v309_v1  ;;  %v586_v23 = vld [vmem:[%s1401_s7 + $0x8] sm:$0xff]  ;;  %s1063_s7 = smov [#allocation2]  }
 0x20a   :  { %v572_v28 = vmax.f32 %v506_v4, 0.0  ;;  %v601_v4 = vpop.permute.xlu1 %600  ;;  %s801_s27 = sshll.u32 %s1063_s7, 4  ;;  %s802_s27 = int_to_ptr.vmem [resolvable:$true] %s801_s27 }
 0x20b   :  { %v571_v29 = vmax.f32 %v501_v27, 0.0  ;;  %v910_v30 = vpop.f32.mrb[4].mxu1  ;;  %981 = vmatprep.subr.bf16.mxu0 %v980_v26  ;;  %1012 = vmatprep.subr.bf16.mxu1 %v980_v26  ;;  %s1038_s6 = scalar_lea.vmem %s802_s27, 512  ;;  %p1043_p1 = scmp.lt.s32.totalorder %s802_s27, %s802_s27 }
 0x20c   :  { %v516_v31 = vadd.f32 %v910_v30, %v324_v16  ;;  %v510_v32 = vpop.f32.mrb[5].mxu1  ;;  %983 = vmatpush3.bf16.msra.mxu0 %v980_v26  ;;  %1020 = vmatpush3.bf16.msra.mxu1 %v980_v26  ;;  %v369_v16 = vpop.permute.xlu0 %368  ;;  %p1039_p0 = scmp.ne.s32.totalorder %s802_s27, %s1038_s6  ;;  %p1044_p2 = scmp.lt.s32.totalorder %s1038_s6, %s1038_s6 }
 0x20d   :  { %v984_v34 = vpack.c.bf16 %v572_v28, %v571_v29  ;;  %v511_v35 = vadd.f32 %v510_v32, %v319_v0 }
 0x20e   :  { %v574_v37 = vmax.f32 %v516_v31, 0.0  ;;  %p1045_p3 = por %p1044_p2, %p1043_p1 }
 0x20f   :  { %v573_v38 = vmax.f32 %v511_v35, 0.0  ;;  %v913_v39 = vpop.f32.mrb[6].mxu1  ;;  %985 = vmatprep.subr.bf16.mxu0 %v984_v34  ;;  %1013 = vmatprep.subr.bf16.mxu1 %v984_v34 }
 0x210   :  { %v526_v40 = vadd.f32 %v913_v39, %v334_v22  ;;  %v520_v41 = vpop.f32.mrb[7].mxu1  ;;  %987 = vmatpush3.bf16.msra.mxu0 %v984_v34  ;;  %1021 = vmatpush3.bf16.msra.mxu1 %v984_v34  ;;  %p1046_p4 = pnand %p1045_p3, %p1039_p0 }
 0x211   :  { %v988_v42 = vpack.c.bf16 %v574_v37, %v573_v38  ;;  %v521_v43 = vadd.f32 %v520_v41, %v329_v24  ;;  %v596_v24 = vpop.permute.xlu0 %595 }
 0x212   :  { %v576_v44 = vmax.f32 %v526_v40, 0.0 }
 0x213   :  { %v575_v46 = vmax.f32 %v521_v43, 0.0  ;;  %v916_v47 = vpop.f32.mrb[8].mxu1  ;;  %989 = vmatprep.subr.bf16.mxu0 %v988_v42  ;;  %1014 = vmatprep.subr.bf16.mxu1 %v988_v42 }
 0x214   :  { %v536_v49 = vadd.f32 %v916_v47, %v344_v33  ;;  %v530_v54 = vpop.f32.mrb[9].mxu1  ;;  %991 = vmatpush3.bf16.msra.mxu0 %v988_v42  ;;  %1022 = vmatpush3.bf16.msra.mxu1 %v988_v42  ;;  %v611_v33 = vpop.permute.xlu1 %610 }
 0x215   :  { %v992_v55 = vpack.c.bf16 %v576_v44, %v575_v46  ;;  %v531_v56 = vadd.f32 %v530_v54, %v339_v36  ;;  %v606_v25 = vpop.permute.xlu0 %605 }
 0x216   :  { %v578_v57 = vmax.f32 %v536_v49, 0.0 }
 0x217   :  { %v577_v58 = vmax.f32 %v531_v56, 0.0  ;;  %v919_v59 = vpop.f32.mrb[10].mxu1  ;;  %993 = vmatprep.subr.bf16.mxu0 %v992_v55  ;;  %1015 = vmatprep.subr.bf16.mxu1 %v992_v55 }
 0x218   :  { %v546_v60 = vadd.f32 %v919_v59, %v354_v45  ;;  %v540_v61 = vpop.f32.mrb[11].mxu1  ;;  %995 = vmatpush3.bf16.msra.mxu0 %v992_v55  ;;  %1023 = vmatpush3.bf16.msra.mxu1 %v992_v55 }
 0x219   :  { %v996_v63 = vpack.c.bf16 %v578_v57, %v577_v58  ;;  %v541_v3 = vadd.f32 %v540_v61, %v349_v48 }
 0x21a   :  { %v580_v6 = vmax.f32 %v546_v60, 0.0 }
 0x21b   :  { %v579_v7 = vmax.f32 %v541_v3, 0.0  ;;  %v922_v8 = vpop.f32.mrb[12].mxu1  ;;  %997 = vmatprep.subr.bf16.mxu0 %v996_v63  ;;  %1016 = vmatprep.subr.bf16.mxu1 %v996_v63 }
 0x21c   :  { %v556_v9 = vadd.f32 %v922_v8, %v364_v62  ;;  %v550_v10 = vpop.f32.mrb[13].mxu1  ;;  %999 = vmatpush3.bf16.msra.mxu0 %v996_v63  ;;  %1024 = vmatpush3.bf16.msra.mxu1 %v996_v63 }
 0x21d   :  { %v1000_v11 = vpack.c.bf16 %v580_v6, %v579_v7  ;;  %v551_v12 = vadd.f32 %v550_v10, %v359_v5  ;;  %v747_v6 = vpop.permute.xlu0 %746  ;;  %v752_v7 = vpop.permute.xlu1 %751 }
 0x21e   :  { %v582_v13 = vmax.f32 %v556_v9, 0.0 }
 0x21f   :  { %v581_v15 = vmax.f32 %v551_v12, 0.0  ;;  %v925_v1 = vpop.f32.mrb[14].mxu1  ;;  %1001 = vmatprep.subr.bf16.mxu0 %v1000_v11  ;;  %1017 = vmatprep.subr.bf16.mxu1 %v1000_v11 }
 0x220   :  { %v566_v0 = vadd.f32 %v925_v1, %v374_v14  ;;  %v560_v17 = vpop.f32.mrb[15].mxu1  ;;  %1003 = vmatpush3.bf16.msra.mxu0 %v1000_v11  ;;  %1025 = vmatpush3.bf16.msra.mxu1 %v1000_v11 }
 0x221   :  { %v1004_v18 = vpack.c.bf16 %v582_v13, %v581_v15  ;;  %v561_v19 = vadd.f32 %v560_v17, %v369_v16  ;;  %v757_v10 = vpop.permute.xlu0 %756  ;;  %v762_v11 = vpop.permute.xlu1 %761 }
 0x222   :  { %v584_v20 = vmax.f32 %v566_v0, 0.0 }
 0x223   :  { %v583_v21 = vmax.f32 %v561_v19, 0.0  ;;  %1005 = vmatprep.subr.bf16.mxu0 %v1004_v18  ;;  %1018 = vmatprep.subr.bf16.mxu1 %v1004_v18 }
 0x224   :  { %1007 = vmatpush3.bf16.msra.mxu0 %v1004_v18  ;;  %1026 = vmatpush3.bf16.msra.mxu1 %v1004_v18 }
 0x225   :  { %v1008_v22 = vpack.c.bf16 %v584_v20, %v583_v21  ;;  %v771_v12 = vpop.permute.xlu0 %770  ;;  %v776_v13 = vpop.permute.xlu1 %775 }
 0x227   :  { %1009 = vmatprep.subr.bf16.mxu0 %v1008_v22  ;;  %1019 = vmatprep.subr.bf16.mxu1 %v1008_v22 }
 0x228   :  { %1011 = vmatpush3.bf16.msra.mxu0 %v1008_v22  ;;  %1027 = vmatpush3.bf16.msra.mxu1 %v1008_v22 }
 0x229   :  { %v781_v21 = vpop.permute.xlu0 %780  ;;  %v786_v22 = vpop.permute.xlu1 %785 }
 0x22b   :  { %959 = vmatmul.mubr.f32.vlgmr.msra.gmra.mrb[4].mxu0 %v586_v23  ;;  %962 = vmatmul.mubr.f32.vlgmr.msra.gmra.mrb[16].mxu1 %v588_v2 }
 0x2fe   :  { %v960_v26 = vpop.f32.mrb[4].mxu0  ;;  %v963_v27 = vpop.f32.mrb[16].mxu1 }
 0x2ff   :  { %v685_v28 = vadd.f32 %v960_v26, %v601_v4  ;;  %v679_v29 = vpop.f32.mrb[5].mxu0  ;;  %v689_v30 = vpop.f32.mrb[17].mxu1  ;;  %v695_v35 = vadd.f32 %v963_v27, %v611_v33 }
 0x300   :  { %v680_v31 = vadd.f32 %v679_v29, %v596_v24  ;;  %v690_v32 = vadd.f32 %v689_v30, %v606_v25 }
 0x301   :  { %v699_v34 = vadd.f32 %v685_v28, %v1296_v51  ;;  %v701_v39 = vadd.f32 %v695_v35, %v1300_v53 }
 0x302   :  { %v698_v36 = vadd.f32 %v680_v31, %v1294_v50  ;;  %v700_v38 = vadd.f32 %v690_v32, %v1298_v52 }
 0x304   :  { %v710_v37 = vadd.f32 %v699_v34, %v698_v36 }
 0x306   :  { %v711_v40 = vadd.f32 %v710_v37, %v700_v38 }
 0x308   :  { %v712_v41 = vadd.f32 %v711_v40, %v701_v39 }
 0x30a   :  { %v713_v42 = vrot.slane %v712_v41, 4 }
 0x30c   :  { %v714_v43 = vadd.f32 %v713_v42, %v712_v41 }
 0x30e   :  { %v715_v44 = vrot.slane %v714_v43, 2 }
 0x310   :  { %v716_v45 = vadd.f32 %v715_v44, %v714_v43 }
 0x312   :  { %v717_v46 = vrot.slane %v716_v45, 1 }
 0x314   :  { %v718_v47 = vadd.f32 %v717_v46, %v716_v45 }
 0x316   :  { %v719_v48 = vmul.f32 0.03125, %v718_v47 }
 0x318   :  { %v720_v49 = vsub.f32 %v698_v36, %v719_v48  ;;  %v721_v54 = vsub.f32 %v699_v34, %v719_v48  ;;  %v722_v51 = vsub.f32 %v700_v38, %v719_v48  ;;  %v723_v55 = vsub.f32 %v701_v39, %v719_v48 }
 0x31a   :  { %v724_v56 = vmul.f32 %v720_v49, %v720_v49  ;;  %v725_v50 = vmul.f32 %v721_v54, %v721_v54  ;;  %v726_v57 = vmul.f32 %v722_v51, %v722_v51  ;;  %v727_v52 = vmul.f32 %v723_v55, %v723_v55 }
 0x31c   :  { %v728_v58 = vadd.f32 %v725_v50, %v724_v56 }
 0x31e   :  { %v729_v59 = vadd.f32 %v728_v58, %v726_v57 }
 0x320   :  { %v730_v53 = vadd.f32 %v729_v59, %v727_v52 }
 0x322   :  { %v731_v60 = vrot.slane %v730_v53, 4 }
 0x324   :  { %v732_v61 = vadd.f32 %v731_v60, %v730_v53 }
 0x326   :  { %v733_v62 = vrot.slane %v732_v61, 2 }
 0x328   :  { %v734_v63 = vadd.f32 %v733_v62, %v732_v61 }
 0x32a   :  { %v735_v3 = vrot.slane %v734_v63, 1 }
 0x32c   :  { %v736_v5 = vadd.f32 %v735_v3, %v734_v63 }
 0x32e   :  { %v737_v8 = vmul.f32 0.03125, %v736_v5 }
 0x330   :  { %v738_v9 = vadd.f32 1e-05, %v737_v8 }
 0x332   :  { %1036 = vrsqrt.f32 %v738_v9 }
 0x33c   :  { %v1037_v14 = vpop.eup %1036 }
 0x33d   :  { %v740_v15 = vmul.f32 %v1037_v14, %v720_v49  ;;  %v741_v1 = vmul.f32 %v1037_v14, %v721_v54  ;;  %v742_v16 = vmul.f32 %v1037_v14, %v722_v51  ;;  %v743_v0 = vmul.f32 %v1037_v14, %v723_v55 }
 0x33f   :  { %v766_v17 = vmul.f32 %v757_v10, %v742_v16  ;;  %v764_v18 = vmul.f32 %v747_v6, %v740_v15  ;;  %v765_v19 = vmul.f32 %v752_v7, %v741_v1  ;;  %v767_v20 = vmul.f32 %v762_v11, %v743_v0 }
 0x341   :  { %v790_v23 = vadd.f32 %v781_v21, %v766_v17  ;;  %v788_v2 = vadd.f32 %v771_v12, %v764_v18  ;;  %v789_v24 = vadd.f32 %v776_v13, %v765_v19  ;;  %v791_v4 = vadd.f32 %v786_v22, %v767_v20 }
 0x343   :  { %794 = vst [vmem:[#allocation2 + $0x10] sm:$0xff] %v790_v23  ;;  %792 = vst [vmem:[#allocation2] sm:$0xff] %v788_v2 }
 0x344   :  { %793 = vst [vmem:[#allocation2 + $0x8] sm:$0xff] %v789_v24  ;;  %795 = vst [vmem:[#allocation2 + $0x18] sm:$0xff] %v791_v4 }
 0x345   :  { %1049 = shalt.err (!%p1046_p4)
}
 0x346   :  { %s1050_s29 = scalar_lea.hbm %s1405_s11, 512 }
 0x347   :  { %p1051_p5 = scmp.ne.s32.totalorder %s1405_s11, %s1050_s29  ;;  %p1054_p6 = scmp.lt.u32.totalorder %s1050_s29, %s1405_s11 }
 0x349   :  { %p1056_p7 = pnand %p1054_p6, %p1051_p5 }
 0x34b   :  { %1059 = shalt.err (!%p1056_p7)
}
 0x34c   :  { %s1064_s8 = smov 128   ;;  %s1065_s14 = smov 8  }
 0x34d   :  { %807 = dma.vmem_to_hbm [thread:$0]  %s802_s27, 512, %s1405_s11, [#allocation3], %s1064_s8, %s1064_s8, %s1065_s14  }
 0x34e   :  { %1060 = dma.done.wait [#allocation3], 512  }
 0x34f   :  { %1061 = vsyncadd [#allocation3], 4294966784 }
 0x350   :  { %811 = vsyncpa [#allocation3], 1 }

</bundles_post_ra>
